<compile_context>
chip_gen: v6e
topology: v6e:2x2x1
jax: 0.10.0
libtpu: 0.0.40
codegen_flags: <defaults>
</compile_context>

<pallas_src>
import jax
import jax.numpy as jnp
from jax.experimental import pallas as pl
from jax.experimental.pallas import tpu as pltpu

_LANE = 128
_SUBLANE = 8


def _round_up(n, m):
    return ((n + m - 1) // m) * m


def _linear_kernel(x_ref, w_ref, b_ref, o_ref):
    """One batch tile: o[0, j] = sum_d x[j, d] * w[0, d] + b."""
    # x_ref: (TB, D) VMEM streamed batch tile
    # w_ref: (1, D)  VMEM grid-invariant weight
    # b_ref: (1, 1)  SMEM scalar bias
    # o_ref: (1, TB) VMEM lane-dense output tile
    x = x_ref[...].astype(jnp.float32)
    w = w_ref[...].astype(jnp.float32)
    # VPU elementwise multiply + XLU lane reduction, exact f32 accumulation.
    col = jnp.sum(x * w, axis=-1, keepdims=True) + b_ref[0, 0]      # (TB, 1)
    # Relayout the thin column to a lane-dense row: plain unmasked stores and a
    # dense output DMA instead of TB/8 masked partial stores on a (TB, 1) block.
    o_ref[...] = jnp.transpose(col, (1, 0)).astype(o_ref.dtype)      # (1, TB)


def _vmem_limit_bytes():
    """Per-kernel VMEM limit derived from the actual chip generation."""
    try:
        cap = int(pltpu.get_tpu_info().vmem_capacity_bytes)
    except Exception:
        cap = 64 * 1024 * 1024          # conservative: v7x has 64 MiB per core
    # Leave ~15% of physical VMEM for Mosaic-internal scratch / semaphores.
    return max(32 * 1024 * 1024, min(int(cap * 0.85), 112 * 1024 * 1024))


def _pick_tile_rows(batch, d, itemsize, vmem_limit):
    """Batch-tile rows sized in bytes with lane/sublane-padded VMEM accounting."""
    d_pad = _round_up(d, _LANE)
    # Per batch row: double-buffered x tile row (lane padded to 128) +
    # double-buffered (1, TB) output (sublane padded to 8) + scratch slack for
    # the (TB, 1) -> (1, TB) relayout.
    per_row = 2 * d_pad * itemsize + 2 * _SUBLANE * 4 + _LANE * 4
    w_bytes = 2 * _SUBLANE * d_pad * itemsize
    headroom = 8 * 1024 * 1024
    avail = vmem_limit - w_bytes - headroom
    tb = max(_SUBLANE, avail // per_row)
    # Cap each tile's *dense* HBM payload at ~16 MiB (grid-step overhead is
    # already <3% there) and bound per-step relayout / XLU work.
    tb = min(tb, max(_SUBLANE, (16 * 1024 * 1024) // (d * itemsize)), 32768)
    # Keep >= 2 batch tiles so the "parallel" grid axis can be sharded across
    # v7x's two TensorCores (neutral on single-core v5e/v6e).
    tb = min(tb, max(_SUBLANE, _round_up(pl.cdiv(batch, 2), _SUBLANE)))
    return int(max(_SUBLANE, (tb // _SUBLANE) * _SUBLANE))


def linear_regression_forward(x, weight, bias, *, tile_rows=None):
    """Pallas equivalent of nn.Linear(input_dim, 1): y = x @ weight.T + bias.

    x:      (B, D) float32
    weight: (1, D) float32   (PyTorch layout: out_features x in_features)
    bias:   (1,)   float32
    returns (B, 1) float32
    """
    orig_b, d = x.shape
    itemsize = jnp.dtype(x.dtype).itemsize

    # Tiny batches only: bring B up to one sublane so the block never exceeds
    # the array. Large batches are never padded (ragged last tile instead).
    b = orig_b
    if b < _SUBLANE:
        x = jnp.pad(x, ((0, _SUBLANE - b), (0, 0)))
        b = _SUBLANE

    vmem_limit = _vmem_limit_bytes()
    if tile_rows is None:
        tb = _pick_tile_rows(b, d, itemsize, vmem_limit)
    else:
        tb = int(tile_rows)
        assert tb % _SUBLANE == 0, "tile_rows must be a multiple of 8"
    tb = max(_SUBLANE, min(tb, (b // _SUBLANE) * _SUBLANE))

    num_tiles = pl.cdiv(b, tb)                     # ragged last tile is allowed
    w = weight.astype(x.dtype)                     # (1, D), grid-invariant
    b_smem = bias.reshape(1, 1).astype(jnp.float32)

    out_tiles = pl.pallas_call(
        _linear_kernel,
        out_shape=jax.ShapeDtypeStruct((num_tiles, tb), x.dtype),
        grid_spec=pltpu.PrefetchScalarGridSpec(
            num_scalar_prefetch=0,
            grid=(num_tiles,),
            in_specs=[
                pl.BlockSpec((tb, d), lambda i: (i, 0)),     # streamed x tiles
                pl.BlockSpec((1, d), lambda i: (0, 0)),      # weight (resident)
                pl.BlockSpec(memory_space=pltpu.SMEM),       # bias scalar
            ],
            out_specs=pl.BlockSpec((1, tb), lambda i: (i, 0)),  # lane-dense rows
        ),
        compiler_params=pltpu.CompilerParams(
            dimension_semantics=("parallel",),               # megacore shard (v7x)
            vmem_limit_bytes=vmem_limit,
        ),
        cost_estimate=pl.CostEstimate(
            flops=2 * orig_b * d,
            transcendentals=0,
            bytes_accessed=itemsize * (orig_b * d + d + orig_b),
        ),
    )(x, w, b_smem)

    # (num_tiles, TB) -> (B, 1); drops any garbage columns of a ragged last tile.
    return out_tiles.reshape(-1)[:orig_b].reshape(orig_b, 1)


if __name__ == "__main__":
    key = jax.random.PRNGKey(0)
    kx, kw, kb, kx2, kx3 = jax.random.split(key, 5)

    input_dim = 32
    bound = 1.0 / jnp.sqrt(jnp.float32(input_dim))
    weight = jax.random.uniform(kw, (1, input_dim), minval=-bound, maxval=bound,
                                dtype=jnp.float32)
    bias = jax.random.uniform(kb, (1,), minval=-bound, maxval=bound,
                              dtype=jnp.float32)

    def ref_fn(xx, ww, bb):
        # Exact f32 elementwise reference (matches the kernel's accumulation).
        return jnp.sum(xx * ww, axis=-1, keepdims=True) + bb

    # 1) Small batch (single tile).
    x1 = jax.random.normal(kx, (8, input_dim), dtype=jnp.float32)
    out1 = jax.block_until_ready(linear_regression_forward(x1, weight, bias))
    assert out1.shape == (8, 1)
    assert jnp.allclose(out1, ref_fn(x1, weight, bias), atol=1e-5, rtol=1e-5)

    # 2) Multi-tile grid with a ragged last tile (no full-array pad), fixed TB.
    x2 = jax.random.normal(kx2, (40, input_dim), dtype=jnp.float32)
    out2 = jax.block_until_ready(
        linear_regression_forward(x2, weight, bias, tile_rows=16))
    assert out2.shape == (40, 1)
    assert jnp.allclose(out2, ref_fn(x2, weight, bias), atol=1e-5, rtol=1e-5)

    # 3) Auto tile sizing, lane-aligned D, ragged batch.
    d3 = 256
    w3 = jax.random.uniform(kw, (1, d3), minval=-0.1, maxval=0.1,
                            dtype=jnp.float32)
    x3 = jax.random.normal(kx3, (300, d3), dtype=jnp.float32)
    out3 = jax.block_until_ready(linear_regression_forward(x3, w3, bias))
    assert out3.shape == (300, 1)
    assert jnp.allclose(out3, ref_fn(x3, w3, bias), atol=1e-5, rtol=1e-5)

    print("KERNEL_OK")
</pallas_src>

<mosaic_0001>
module attributes {stable_mosaic.version = 11 : i64} {
  func.func @_linear_kernel(%arg0: i32, %arg1: memref<8x32xf32, #tpu.memory_space<vmem>>, %arg2: memref<1x32xf32, #tpu.memory_space<vmem>>, %arg3: memref<1x1xf32, #tpu.memory_space<smem>>, %arg4: memref<1x8xf32, #tpu.memory_space<vmem>>) attributes {dimension_semantics = [#tpu.dimension_semantics<parallel>], iteration_bounds = array<i64: 1>, scalar_prefetch = 0 : i64, scratch_operands = 0 : i64, tpu.core_type = #tpu.core_type<tc>, window_params = [{transform_indices = @transform_0, window_bounds = array<i64: 8, 32>}, {pipeline_mode = #tpu.pipeline_mode<synchronous>, transform_indices = @transform_1, window_bounds = array<i64: 1, 32>}, {transform_indices = @transform_2, window_bounds = array<i64: 1, 1>}, {transform_indices = @transform_3, window_bounds = array<i64: 1, 8>}]} {
    %c0 = arith.constant 0 : index
    %c0_0 = arith.constant 0 : index
    %0 = vector.load %arg1[%c0, %c0_0] : memref<8x32xf32, #tpu.memory_space<vmem>>, vector<8x32xf32>
    %c0_1 = arith.constant 0 : index
    %c0_2 = arith.constant 0 : index
    %1 = vector.load %arg2[%c0_1, %c0_2] : memref<1x32xf32, #tpu.memory_space<vmem>>, vector<1x32xf32>
    %2 = vector.broadcast %1 : vector<1x32xf32> to vector<8x32xf32>
    %3 = arith.mulf %0, %2 : vector<8x32xf32>
    %cst = arith.constant dense<0.000000e+00> : vector<8xf32>
    %4 = vector.multi_reduction <add>, %3, %cst [1] : vector<8x32xf32> to vector<8xf32>
    %5 = vector.shape_cast %4 : vector<8xf32> to vector<8x1xf32>
    %c0_3 = arith.constant 0 : index
    %c0_4 = arith.constant 0 : index
    %6 = memref.load %arg3[%c0_3, %c0_4] : memref<1x1xf32, #tpu.memory_space<smem>>
    %7 = vector.broadcast %6 : f32 to vector<8x1xf32>
    %8 = arith.addf %5, %7 : vector<8x1xf32>
    %9 = tpu.transpose %8, [1, 0] : vector<8x1xf32> -> vector<1x8xf32>
    %c0_5 = arith.constant 0 : index
    %c0_6 = arith.constant 0 : index
    %10 = vector.load %arg4[%c0_5, %c0_6] : memref<1x8xf32, #tpu.memory_space<vmem>>, vector<1x8xf32>
    tpu.vector_store %arg4[%c0_5, %c0_6], %9 {strides = array<i32>} : memref<1x8xf32, #tpu.memory_space<vmem>>, vector<1x8xf32>,
    return
  }
  func.func @transform_0(%arg0: i32) -> (i32, i32) {
    %c0_i32 = arith.constant 0 : i32
    %c0_i32_0 = arith.constant 0 : i32
    return %arg0, %c0_i32 : i32, i32
  }
  func.func @transform_1(%arg0: i32) -> (i32, i32) {
    %c0_i32 = arith.constant 0 : i32
    %c0_i32_0 = arith.constant 0 : i32
    %c0_i32_1 = arith.constant 0 : i32
    return %c0_i32, %c0_i32_0 : i32, i32
  }
  func.func @transform_2(%arg0: i32) -> (i32, i32) {
    %c0_i32 = arith.constant 0 : i32
    %c0_i32_0 = arith.constant 0 : i32
    %c0_i32_1 = arith.constant 0 : i32
    return %c0_i32, %c0_i32_0 : i32, i32
  }
  func.func @transform_3(%arg0: i32) -> (i32, i32) {
    %c0_i32 = arith.constant 0 : i32
    %c0_i32_0 = arith.constant 0 : i32
    return %arg0, %c0_i32 : i32, i32
  }
}

</mosaic_0001>

<bundles_post_ra>
// kernel: tpu_custom_call.1
= control target key start
LH: loop header
LB: loop body
LE: loop exit
PB: predicated region body
PF: predicated region fallthrough
CT: control target
= control target key end

     0   :  { %9 = vsyncpa [#allocation4], 0  ;;  %s175_s0 = inlined_call_operand.hbm [shape: f32[8,32], index: 0, kind: input, shape index: {}]   ;;  %s176_s1 = inlined_call_operand.vmem [shape: f32[1,32], index: 1, kind: input, shape index: {}]   ;;  %s177_s2 = inlined_call_operand.<no memory space> [shape: f32[1,1], index: 2, kind: input, shape index: {}]   ;;  %s178_s3 = inlined_call_operand.hbm [shape: f32[1,8], index: 3, kind: output, shape index: {}]  }
   0x1   :  { %10 = vsyncpa [#allocation5], 0  ;;  %s141_s12 = smov [#allocation3]  }
   0x2   :  { %s17_s13 = sshll.u32 %s141_s12, 4  ;;  %s18_s13 = int_to_ptr.vmem [resolvable:$true] %s17_s13 }
   0x3   :  { %s105_s14 = scalar_lea.vmem %s18_s13, 128  ;;  %p110_p1 = scmp.lt.s32.totalorder %s18_s13, %s18_s13 }
   0x4   :  { %p106_p0 = scmp.ne.s32.totalorder %s18_s13, %s105_s14  ;;  %p111_p2 = scmp.lt.s32.totalorder %s105_s14, %s105_s14 }
   0x6   :  { %p112_p3 = por %p111_p2, %p110_p1 }
   0x8   :  { %p113_p4 = pnand %p112_p3, %p106_p0 }
   0xa   :  { %116 = shalt.err (!%p113_p4)
}
   0xb   :  { %20 = dma.hbm_to_vmem [thread:$0]  %s175_s0, 128, %s18_s13, [#allocation4]  }
   0xc   :  { %137 = dma.done.wait [#allocation4], 128  }
   0xd   :  { %138 = vsyncadd [#allocation4], 4294967168  ;;  %v28_v0 = vld [vmem:[#allocation3] sm:$0xff]  ;;  %vm37_vm0 = vcmask 261120   ;;  %v42_v4 = vstv %s177_s2  ;;  %s142_s21 = smov [#allocation6]   ;;  %vm76_vm1 = vcmask 57344  }
   0xe   :  { %v93_v1 = vld [vmem:[%s176_s1] ss:$0 sm:$0xff]  ;;  %s84_s0 = sshll.u32 %s142_s21, 4  ;;  %s85_s0 = int_to_ptr.vmem [resolvable:$true] %s84_s0 }
   0xf   :  { %v36_v2 = vmul.f32 %v93_v1, %v28_v0  ;;  %s117_s22 = scalar_lea.vmem %s85_s0, 16  ;;  %s121_s1 = scalar_lea.vmem %s85_s0, 32 }
  0x10   :  { %p118_p5 = scmp.ne.s32.totalorder %s85_s0, %s117_s22  ;;  %p122_p6 = scmp.lt.s32.totalorder %s85_s0, %s85_s0 }
  0x11   :  { %v38_v3 = vsel %vm37_vm0, %v36_v2, 0.0  ;;  %p123_p7 = scmp.lt.s32.totalorder %s121_s1, %s117_s22 }
  0x12   :  { %39 = vadd.xlane.f32.xlu0 %v38_v3 }
  0x13   :  { %p124_p8 = por %p123_p7, %p122_p6 }
  0x15   :  { %p125_p9 = pnand %p124_p8, %p118_p5 }
  0x9b   :  { %v40_v5 = vpop.xlane.xlu0 %39 }
  0x9c   :  { %v43_v6 = vadd.f32 %v42_v4, %v40_v5 }
  0x9e   :  { %44 = vxpose.xlu0.b32.start.end [1/1] (short) (narrow) %v43_v6, 8 }
 0x11a   :  { %v60_v7 = vpop.trf.xlu0 }
 0x11b   :  { %77 = vst.msk [vmem:[#allocation6] sm:$0x1] %vm76_vm1, %v60_v7 }
 0x11c   :  { %128 = shalt.err (!%p125_p9)
}
 0x11d   :  { %87 = dma.vmem_to_hbm [thread:$0]  %s85_s0, 16, %s178_s3, [#allocation5]  }
 0x11e   :  { %139 = dma.done.wait [#allocation5], 16  }
 0x11f   :  { %140 = vsyncadd [#allocation5], 4294967280 }
 0x120   :  { %91 = vsyncpa [#allocation4], 1 }
 0x121   :  { %92 = vsyncpa [#allocation5], 1 }

</bundles_post_ra>
